<compile_context>
chip_gen: v5e
topology: v5e:2x2
jax: 0.10.0
libtpu: 0.0.40
codegen_flags: <defaults>
</compile_context>

<pallas_src>
import functools

import jax
import jax.numpy as jnp
from jax import lax
from jax.experimental import pallas as pl
from jax.experimental.pallas import tpu as pltpu


def _round_up(x: int, m: int) -> int:
    return -(-x // m) * m


def _vmem_capacity_bytes() -> int:
    """Physical VMEM per TensorCore; conservative fallback if the query fails."""
    try:
        info = pltpu.get_tpu_info()
        for attr in ("vmem_capacity_bytes", "vmem_size_bytes", "vmem_bytes"):
            v = getattr(info, attr, None)
            if v:
                return int(v)
    except Exception:
        pass
    return 64 * 1024 * 1024  # v7x-sized lower bound; safe on v5e/v6e too


def _choose_q_tiling(n: int, vmem_cap: int):
    """Return (tq, n_pad): query-tile size and padded sequence length."""
    big_vmem = vmem_cap >= 96 * 1024 * 1024          # 128 MiB parts (v5e/v6e)
    cands = (512, 256, 128) if big_vmem else (256, 128)
    for t in cands:
        if n % t == 0:
            return t, n
    if n <= cands[-1]:
        # Short sequence: one sublane-aligned tile covers everything.
        n_pad = _round_up(n, 8)
        return n_pad, n_pad
    # Pad queries to a lane/sublane friendly length; padded keys are masked.
    n_pad = _round_up(n, 128)
    for t in cands:
        if n_pad % t == 0:
            return t, n_pad
    return 128, n_pad


def _attention_kernel(x_ref, wq_ref, wkv_ref, wo_ref, bo_ref, o_ref,
                      kv_ref, ocat_ref, *, num_heads: int, head_dim: int,
                      dim: int, tq: int, kv_len: int, exp_dtype, approx_recip):
    n_pad = x_ref.shape[1]

    # ---- K/V for the full (padded) sequence, head-major, once per batch ----
    # Requires the inner (qi) grid axis to run sequentially -> it MUST stay
    # "arbitrary" in dimension_semantics (see compiler_params below).
    @pl.when(pl.program_id(1) == 0)
    def _():
        kv = jnp.dot(x_ref[0], wkv_ref[...],
                     preferred_element_type=jnp.float32)          # (n_pad, 2C)
        kv = kv.astype(kv_ref.dtype)
        # Head-major scratch: pay the lane-offset relayout once per batch
        # element instead of 2*H times per query tile.
        for h in range(num_heads):
            lo = h * head_dim
            kv_ref[h] = kv[:, lo:lo + head_dim]                            # K_h
            kv_ref[num_heads + h] = kv[:, dim + lo:dim + lo + head_dim]    # V_h

    # ---- Q projection for this query tile (softmax scale folded into Wq) ---
    q_start = pl.multiple_of(pl.program_id(1) * tq, tq)
    x_t = x_ref[0, pl.ds(q_start, tq), :]                          # (tq, C)
    q = jnp.dot(x_t, wq_ref[...], preferred_element_type=jnp.float32)
    q = q.astype(x_t.dtype)

    need_mask = kv_len < n_pad
    if need_mask:
        key_mask = lax.broadcasted_iota(jnp.int32, (tq, n_pad), 1) < kv_len

    # NOTE: static python loop over heads (a fori_loop would need dynamic lane
    # offsets for the q slice / ocat write).  The VMEM budget below accounts
    # for multiple live (tq, n_pad) f32 score buffers to compensate.
    for h in range(num_heads):
        lo = h * head_dim
        qh = q[:, lo:lo + head_dim]                                 # (tq, hd)
        kh = kv_ref[h]                                              # (n_pad, hd)
        vh = kv_ref[num_heads + h]                                  # (n_pad, hd)

        # Scores: contract last dims directly (no materialized K transpose).
        s = lax.dot_general(qh, kh, (((1,), (1,)), ((), ())),
                            preferred_element_type=jnp.float32)    # (tq, n_pad)
        if need_mask:
            s = jnp.where(key_mask, s, -1e30)

        m = jnp.max(s, axis=-1, keepdims=True)
        p = jnp.exp((s - m).astype(exp_dtype))     # bf16 exp on the bf16 path
        l = jnp.sum(p, axis=-1, keepdims=True, dtype=jnp.float32)

        oh = jnp.dot(p.astype(vh.dtype), vh,
                     preferred_element_type=jnp.float32)            # (tq, hd)
        # Deferred softmax normalization on the small (tq, hd) tile.
        oh = oh * pl.reciprocal(l, approx=approx_recip)
        ocat_ref[:, lo:lo + head_dim] = oh.astype(ocat_ref.dtype)

    # ---- Single full-depth (K = C) output projection + bias ----------------
    out = jnp.dot(ocat_ref[...], wo_ref[...],
                  preferred_element_type=jnp.float32) + bo_ref[...]
    o_ref[0] = out.astype(o_ref.dtype)


def original_attention(x, w_qkv, w_proj, b_proj, *, num_heads: int,
                       compute_dtype=jnp.bfloat16):
    """x: (B, N, C); w_qkv: (3C, C) torch layout; w_proj: (C, C); b_proj: (C,)."""
    B, N, C = x.shape
    assert C % num_heads == 0
    head_dim = C // num_heads
    scale = head_dim ** (-0.5)
    cdt = jnp.dtype(compute_dtype)

    # Weight prep: pre-transpose so the kernel right-multiplies, fold the
    # softmax scale into Wq, fuse K and V into one (C, 2C) matrix.
    wq = (w_qkv[0 * C:1 * C].T * scale).astype(cdt)      # (C, C)
    wkv = w_qkv[1 * C:3 * C].T.astype(cdt)               # (C, 2C) = [K|V]
    wo = w_proj.T.astype(cdt)                            # (C, C)
    bo = b_proj.reshape(1, C).astype(jnp.float32)

    vmem_cap = _vmem_capacity_bytes()
    tq, n_pad = _choose_q_tiling(N, vmem_cap)
    nq = n_pad // tq

    x_c = x.astype(cdt)
    if n_pad != N:
        # Pad the sequence axis; padded KEY columns are masked to -inf in the
        # kernel, padded QUERY rows are sliced off below.
        x_c = jnp.pad(x_c, ((0, 0), (0, n_pad - N), (0, 0)))

    approx_recip = cdt != jnp.dtype(jnp.float32)   # exact reciprocal on f32 path
    exp_dtype = jnp.bfloat16 if cdt == jnp.dtype(jnp.bfloat16) else jnp.float32

    kernel = functools.partial(
        _attention_kernel, num_heads=num_heads, head_dim=head_dim, dim=C,
        tq=tq, kv_len=N, exp_dtype=exp_dtype, approx_recip=approx_recip)

    # ---- VMEM budgeting ----------------------------------------------------
    cs = cdt.itemsize
    hd_lanes = _round_up(head_dim, 128)            # minor-dim lane padding
    weight_bytes = 4 * C * C * cs + 128 * 4        # wq + wkv + wo + bias
    vmem_est = (
        2 * n_pad * C * cs                         # x block (double-buffered)
        + weight_bytes                             # invariant weights
        + 2 * num_heads * n_pad * hd_lanes * cs    # head-major K|V scratch
        + tq * C * cs                              # per-head output concat
        + 2 * tq * C * jnp.dtype(x.dtype).itemsize # output tile (double-buffered)
        + tq * C * 4                               # q (f32)
        + 3 * tq * n_pad * 4                       # live f32 score/prob buffers
        + 2 * tq * C * 4                           # projection result / bias add
    )
    # Never ask for more than 80% of physical VMEM (Mosaic-internal headroom):
    # ~51 MiB on v7x, ~102 MiB on v5e/v6e.
    vmem_limit = int(min(max(1.3 * vmem_est, 32 * 1024 * 1024), 0.8 * vmem_cap))

    # Grid-invariant operands: single-buffer them when they are big enough to
    # matter (saves ~4*C^2 bytes of double-buffer VMEM, important on v7x).
    single_buffer_weights = weight_bytes > (1 << 20)

    def invariant_spec(shape):
        index_map = lambda b, qi: (0,) * len(shape)
        if single_buffer_weights:
            try:
                return pl.BlockSpec(shape, index_map,
                                    pipeline_mode=pl.Buffered(1))
            except (TypeError, AttributeError):
                pass
        return pl.BlockSpec(shape, index_map)

    out = pl.pallas_call(
        kernel,
        out_shape=jax.ShapeDtypeStruct((B, n_pad, C), x.dtype),
        grid_spec=pltpu.PrefetchScalarGridSpec(
            num_scalar_prefetch=0,
            grid=(B, nq),
            in_specs=[
                pl.BlockSpec((1, n_pad, C), lambda b, qi: (b, 0, 0)),  # x (full)
                invariant_spec((C, C)),          # Wq (scale folded)
                invariant_spec((C, 2 * C)),      # W_kv fused
                invariant_spec((C, C)),          # Wo
                invariant_spec((1, C)),          # proj bias
            ],
            out_specs=pl.BlockSpec((1, tq, C), lambda b, qi: (b, qi, 0)),
            scratch_shapes=[
                pltpu.VMEM((2 * num_heads, n_pad, head_dim), cdt),  # K|V cache
                pltpu.VMEM((tq, C), cdt),                           # head concat
            ]),
        # Inner (query-tile) axis must stay sequential ("arbitrary"): the K/V
        # scratch is filled at qi==0 and reused by later tiles of the same b.
        compiler_params=pltpu.CompilerParams(
            dimension_semantics=("parallel", "arbitrary"),
            vmem_limit_bytes=vmem_limit),
    )(x_c, wq, wkv, wo, bo)

    return out[:, :N] if n_pad != N else out


def _reference(x, w_qkv, w_proj, b_proj, *, num_heads: int):
    """Pure-JAX replica of the PyTorch forward for verification."""
    B, N, C = x.shape
    hd = C // num_heads
    scale = hd ** (-0.5)
    qkv = jnp.einsum('bnc,dc->bnd', x, w_qkv)               # (B, N, 3C)
    qkv = qkv.reshape(B, N, 3, num_heads, hd).transpose(2, 0, 3, 1, 4)
    q, k, v = qkv[0], qkv[1], qkv[2]                        # (B, H, N, hd)
    q = q * scale
    attn = jnp.einsum('bhqd,bhkd->bhqk', q, k)
    attn = jax.nn.softmax(attn, axis=-1)
    o = jnp.einsum('bhqk,bhkd->bhqd', attn, v)
    o = o.transpose(0, 2, 1, 3).reshape(B, N, C)
    return jnp.einsum('bnc,dc->bnd', o, w_proj) + b_proj


if __name__ == "__main__":
    B, N, C = 2, 8, 32
    num_heads = 4
    # NOTE: at this toy size (C=32 < 128 lanes) stores are masked partial vst;
    # real ViT widths (C multiple of 128) are lane-dense.
    # TODO(synk): dropout layers are identity at p=0.0 and are not implemented.

    key = jax.random.PRNGKey(0)
    kx, kqkv, kproj, kb = jax.random.split(key, 4)
    x = jax.random.normal(kx, (B, N, C), dtype=jnp.float32)
    w_qkv = jax.random.normal(kqkv, (3 * C, C), dtype=jnp.float32) * 0.05
    w_proj = jax.random.normal(kproj, (C, C), dtype=jnp.float32) * 0.05
    b_proj = jax.random.normal(kb, (C,), dtype=jnp.float32) * 0.01

    ref = _reference(x, w_qkv, w_proj, b_proj, num_heads=num_heads)

    # bf16 MXU path (default).
    out_bf16 = original_attention(x, w_qkv, w_proj, b_proj,
                                  num_heads=num_heads,
                                  compute_dtype=jnp.bfloat16)
    out_bf16 = jax.block_until_ready(out_bf16)
    assert out_bf16.shape == (B, N, C)
    assert jnp.allclose(out_bf16, ref, atol=3e-2, rtol=3e-2), "bf16 mismatch"

    # f32 path (tight check of kernel structure; exact reciprocal, f32 exp).
    out_f32 = original_attention(x, w_qkv, w_proj, b_proj,
                                 num_heads=num_heads,
                                 compute_dtype=jnp.float32)
    out_f32 = jax.block_until_ready(out_f32)
    assert jnp.allclose(out_f32, ref, atol=5e-3, rtol=5e-3), "f32 mismatch"

    print("KERNEL_OK")
</pallas_src>

<mosaic_0001>
module attributes {stable_mosaic.version = 11 : i64} {
  func.func @_attention_kernel(%arg0: i32, %arg1: i32, %arg2: memref<1x8x32xbf16, #tpu.memory_space<vmem>>, %arg3: memref<32x32xbf16, #tpu.memory_space<vmem>>, %arg4: memref<32x64xbf16, #tpu.memory_space<vmem>>, %arg5: memref<32x32xbf16, #tpu.memory_space<vmem>>, %arg6: memref<1x32xf32, #tpu.memory_space<vmem>>, %arg7: memref<1x8x32xf32, #tpu.memory_space<vmem>>, %arg8: memref<8x8x8xbf16, #tpu.memory_space<vmem>>, %arg9: memref<8x32xbf16, #tpu.memory_space<vmem>>) attributes {dimension_semantics = [#tpu.dimension_semantics<parallel>, #tpu.dimension_semantics<arbitrary>], iteration_bounds = array<i64: 2, 1>, scalar_prefetch = 0 : i64, scratch_operands = 2 : i64, tpu.core_type = #tpu.core_type<tc>, window_params = [{transform_indices = @transform_0, window_bounds = array<i64: 1, 8, 32>}, {pipeline_mode = #tpu.pipeline_mode<synchronous>, transform_indices = @transform_1, window_bounds = array<i64: 32, 32>}, {pipeline_mode = #tpu.pipeline_mode<synchronous>, transform_indices = @transform_2, window_bounds = array<i64: 32, 64>}, {pipeline_mode = #tpu.pipeline_mode<synchronous>, transform_indices = @transform_3, window_bounds = array<i64: 32, 32>}, {pipeline_mode = #tpu.pipeline_mode<synchronous>, transform_indices = @transform_4, window_bounds = array<i64: 1, 32>}, {transform_indices = @transform_5, window_bounds = array<i64: 1, 8, 32>}]} {
    %c0_i32 = arith.constant 0 : i32
    %0 = arith.cmpi eq, %arg1, %c0_i32 : i32
    %1 = arith.extui %0 : i1 to i32
    %c0_i32_0 = arith.constant 0 : i32
    %2 = arith.cmpi ne, %1, %c0_i32_0 : i32
    scf.if %2 {
      %c0_52 = arith.constant 0 : index
      %c0_53 = arith.constant 0 : index
      %c0_54 = arith.constant 0 : index
      %104 = vector.load %arg2[%c0_52, %c0_53, %c0_54] : memref<1x8x32xbf16, #tpu.memory_space<vmem>>, vector<1x8x32xbf16>
      %105 = vector.shape_cast %104 : vector<1x8x32xbf16> to vector<8x32xbf16>
      %c0_55 = arith.constant 0 : index
      %c0_56 = arith.constant 0 : index
      %106 = vector.load %arg4[%c0_55, %c0_56] : memref<32x64xbf16, #tpu.memory_space<vmem>>, vector<32x64xbf16>
      %cst_57 = arith.constant dense<0.000000e+00> : vector<8x64xf32>
      %107 = tpu.matmul %105, %106, %cst_57 {dimension_numbers = #tpu.dot_dimension_numbers<[1], [0], [0], [1], [0, 0, 1, 1], [], []>} : vector<8x32xbf16>, vector<32x64xbf16>, vector<8x64xf32> -> vector<8x64xf32>
      %108 = arith.truncf %107 : vector<8x64xf32> to vector<8x64xbf16>
      %109 = vector.extract_strided_slice %108 {offsets = [0, 0], sizes = [8, 8], strides = [1, 1]} : vector<8x64xbf16> to vector<8x8xbf16>
      %c0_58 = arith.constant 0 : index
      %c0_59 = arith.constant 0 : index
      %c0_60 = arith.constant 0 : index
      %110 = vector.load %arg8[%c0_58, %c0_59, %c0_60] : memref<8x8x8xbf16, #tpu.memory_space<vmem>>, vector<1x8x8xbf16>
      %111 = vector.shape_cast %110 : vector<1x8x8xbf16> to vector<8x8xbf16>
      %112 = vector.shape_cast %109 : vector<8x8xbf16> to vector<1x8x8xbf16>
      tpu.vector_store %arg8[%c0_58, %c0_59, %c0_60], %112 {strides = array<i32>} : memref<8x8x8xbf16, #tpu.memory_space<vmem>>, vector<1x8x8xbf16>,
      %113 = vector.extract_strided_slice %108 {offsets = [0, 32], sizes = [8, 8], strides = [1, 1]} : vector<8x64xbf16> to vector<8x8xbf16>
      %c4_61 = arith.constant 4 : index
      %c0_62 = arith.constant 0 : index
      %c0_63 = arith.constant 0 : index
      %114 = vector.load %arg8[%c4_61, %c0_62, %c0_63] : memref<8x8x8xbf16, #tpu.memory_space<vmem>>, vector<1x8x8xbf16>
      %115 = vector.shape_cast %114 : vector<1x8x8xbf16> to vector<8x8xbf16>
      %116 = vector.shape_cast %113 : vector<8x8xbf16> to vector<1x8x8xbf16>
      tpu.vector_store %arg8[%c4_61, %c0_62, %c0_63], %116 {strides = array<i32>} : memref<8x8x8xbf16, #tpu.memory_space<vmem>>, vector<1x8x8xbf16>,
      %117 = vector.extract_strided_slice %108 {offsets = [0, 8], sizes = [8, 8], strides = [1, 1]} : vector<8x64xbf16> to vector<8x8xbf16>
      %c1_64 = arith.constant 1 : index
      %c0_65 = arith.constant 0 : index
      %c0_66 = arith.constant 0 : index
      %118 = vector.load %arg8[%c1_64, %c0_65, %c0_66] : memref<8x8x8xbf16, #tpu.memory_space<vmem>>, vector<1x8x8xbf16>
      %119 = vector.shape_cast %118 : vector<1x8x8xbf16> to vector<8x8xbf16>
      %120 = vector.shape_cast %117 : vector<8x8xbf16> to vector<1x8x8xbf16>
      tpu.vector_store %arg8[%c1_64, %c0_65, %c0_66], %120 {strides = array<i32>} : memref<8x8x8xbf16, #tpu.memory_space<vmem>>, vector<1x8x8xbf16>,
      %121 = vector.extract_strided_slice %108 {offsets = [0, 40], sizes = [8, 8], strides = [1, 1]} : vector<8x64xbf16> to vector<8x8xbf16>
      %c5_67 = arith.constant 5 : index
      %c0_68 = arith.constant 0 : index
      %c0_69 = arith.constant 0 : index
      %122 = vector.load %arg8[%c5_67, %c0_68, %c0_69] : memref<8x8x8xbf16, #tpu.memory_space<vmem>>, vector<1x8x8xbf16>
      %123 = vector.shape_cast %122 : vector<1x8x8xbf16> to vector<8x8xbf16>
      %124 = vector.shape_cast %121 : vector<8x8xbf16> to vector<1x8x8xbf16>
      tpu.vector_store %arg8[%c5_67, %c0_68, %c0_69], %124 {strides = array<i32>} : memref<8x8x8xbf16, #tpu.memory_space<vmem>>, vector<1x8x8xbf16>,
      %125 = vector.extract_strided_slice %108 {offsets = [0, 16], sizes = [8, 8], strides = [1, 1]} : vector<8x64xbf16> to vector<8x8xbf16>
      %c2_70 = arith.constant 2 : index
      %c0_71 = arith.constant 0 : index
      %c0_72 = arith.constant 0 : index
      %126 = vector.load %arg8[%c2_70, %c0_71, %c0_72] : memref<8x8x8xbf16, #tpu.memory_space<vmem>>, vector<1x8x8xbf16>
      %127 = vector.shape_cast %126 : vector<1x8x8xbf16> to vector<8x8xbf16>
      %128 = vector.shape_cast %125 : vector<8x8xbf16> to vector<1x8x8xbf16>
      tpu.vector_store %arg8[%c2_70, %c0_71, %c0_72], %128 {strides = array<i32>} : memref<8x8x8xbf16, #tpu.memory_space<vmem>>, vector<1x8x8xbf16>,
      %129 = vector.extract_strided_slice %108 {offsets = [0, 48], sizes = [8, 8], strides = [1, 1]} : vector<8x64xbf16> to vector<8x8xbf16>
      %c6_73 = arith.constant 6 : index
      %c0_74 = arith.constant 0 : index
      %c0_75 = arith.constant 0 : index
      %130 = vector.load %arg8[%c6_73, %c0_74, %c0_75] : memref<8x8x8xbf16, #tpu.memory_space<vmem>>, vector<1x8x8xbf16>
      %131 = vector.shape_cast %130 : vector<1x8x8xbf16> to vector<8x8xbf16>
      %132 = vector.shape_cast %129 : vector<8x8xbf16> to vector<1x8x8xbf16>
      tpu.vector_store %arg8[%c6_73, %c0_74, %c0_75], %132 {strides = array<i32>} : memref<8x8x8xbf16, #tpu.memory_space<vmem>>, vector<1x8x8xbf16>,
      %133 = vector.extract_strided_slice %108 {offsets = [0, 24], sizes = [8, 8], strides = [1, 1]} : vector<8x64xbf16> to vector<8x8xbf16>
      %c3_76 = arith.constant 3 : index
      %c0_77 = arith.constant 0 : index
      %c0_78 = arith.constant 0 : index
      %134 = vector.load %arg8[%c3_76, %c0_77, %c0_78] : memref<8x8x8xbf16, #tpu.memory_space<vmem>>, vector<1x8x8xbf16>
      %135 = vector.shape_cast %134 : vector<1x8x8xbf16> to vector<8x8xbf16>
      %136 = vector.shape_cast %133 : vector<8x8xbf16> to vector<1x8x8xbf16>
      tpu.vector_store %arg8[%c3_76, %c0_77, %c0_78], %136 {strides = array<i32>} : memref<8x8x8xbf16, #tpu.memory_space<vmem>>, vector<1x8x8xbf16>,
      %137 = vector.extract_strided_slice %108 {offsets = [0, 56], sizes = [8, 8], strides = [1, 1]} : vector<8x64xbf16> to vector<8x8xbf16>
      %c7_79 = arith.constant 7 : index
      %c0_80 = arith.constant 0 : index
      %c0_81 = arith.constant 0 : index
      %138 = vector.load %arg8[%c7_79, %c0_80, %c0_81] : memref<8x8x8xbf16, #tpu.memory_space<vmem>>, vector<1x8x8xbf16>
      %139 = vector.shape_cast %138 : vector<1x8x8xbf16> to vector<8x8xbf16>
      %140 = vector.shape_cast %137 : vector<8x8xbf16> to vector<1x8x8xbf16>
      tpu.vector_store %arg8[%c7_79, %c0_80, %c0_81], %140 {strides = array<i32>} : memref<8x8x8xbf16, #tpu.memory_space<vmem>>, vector<1x8x8xbf16>,
    } else {
    }
    %c8_i32 = arith.constant 8 : i32
    %3 = arith.muli %arg1, %c8_i32 : i32
    %4 = tpu.assume_multiple %3, 8 : i32
    %c0 = arith.constant 0 : index
    %5 = arith.index_cast %4 : i32 to index
    %c0_1 = arith.constant 0 : index
    %6 = vector.load %arg2[%c0, %5, %c0_1] : memref<1x8x32xbf16, #tpu.memory_space<vmem>>, vector<1x8x32xbf16>
    %7 = vector.shape_cast %6 : vector<1x8x32xbf16> to vector<8x32xbf16>
    %c0_2 = arith.constant 0 : index
    %c0_3 = arith.constant 0 : index
    %8 = vector.load %arg3[%c0_2, %c0_3] : memref<32x32xbf16, #tpu.memory_space<vmem>>, vector<32x32xbf16>
    %cst = arith.constant dense<0.000000e+00> : vector<8x32xf32>
    %9 = tpu.matmul %7, %8, %cst {dimension_numbers = #tpu.dot_dimension_numbers<[1], [0], [0], [1], [0, 0, 1, 1], [], []>} : vector<8x32xbf16>, vector<32x32xbf16>, vector<8x32xf32> -> vector<8x32xf32>
    %10 = arith.truncf %9 : vector<8x32xf32> to vector<8x32xbf16>
    %11 = vector.extract_strided_slice %10 {offsets = [0, 0], sizes = [8, 8], strides = [1, 1]} : vector<8x32xbf16> to vector<8x8xbf16>
    %c0_4 = arith.constant 0 : index
    %c0_5 = arith.constant 0 : index
    %c0_6 = arith.constant 0 : index
    %12 = vector.load %arg8[%c0_4, %c0_5, %c0_6] : memref<8x8x8xbf16, #tpu.memory_space<vmem>>, vector<1x8x8xbf16>
    %13 = vector.shape_cast %12 : vector<1x8x8xbf16> to vector<8x8xbf16>
    %c4 = arith.constant 4 : index
    %c0_7 = arith.constant 0 : index
    %c0_8 = arith.constant 0 : index
    %14 = vector.load %arg8[%c4, %c0_7, %c0_8] : memref<8x8x8xbf16, #tpu.memory_space<vmem>>, vector<1x8x8xbf16>
    %15 = vector.shape_cast %14 : vector<1x8x8xbf16> to vector<8x8xbf16>
    %cst_9 = arith.constant dense<0.000000e+00> : vector<8x8xf32>
    %16 = tpu.matmul %11, %13, %cst_9 {dimension_numbers = #tpu.dot_dimension_numbers<[1], [1], [0], [0], [0, 0, 1, 0], [], []>} : vector<8x8xbf16>, vector<8x8xbf16>, vector<8x8xf32> -> vector<8x8xf32>
    %cst_10 = arith.constant dense<0xFF800000> : vector<8xf32>
    %17 = vector.multi_reduction <maximumf>, %16, %cst_10 [1] : vector<8x8xf32> to vector<8xf32>
    %18 = vector.shape_cast %17 : vector<8xf32> to vector<8x1xf32>
    %19 = vector.broadcast %18 : vector<8x1xf32> to vector<8x8xf32>
    %20 = arith.subf %16, %19 : vector<8x8xf32>
    %21 = arith.truncf %20 : vector<8x8xf32> to vector<8x8xbf16>
    %22 = math.exp %21 : vector<8x8xbf16>
    %23 = arith.extf %22 : vector<8x8xbf16> to vector<8x8xf32>
    %cst_11 = arith.constant dense<0.000000e+00> : vector<8xf32>
    %24 = vector.multi_reduction <add>, %23, %cst_11 [1] : vector<8x8xf32> to vector<8xf32>
    %25 = vector.shape_cast %24 : vector<8xf32> to vector<8x1xf32>
    %cst_12 = arith.constant dense<0.000000e+00> : vector<8x8xf32>
    %26 = tpu.matmul %22, %15, %cst_12 {dimension_numbers = #tpu.dot_dimension_numbers<[1], [0], [0], [1], [0, 0, 1, 1], [], []>} : vector<8x8xbf16>, vector<8x8xbf16>, vector<8x8xf32> -> vector<8x8xf32>
    %27 = tpu.reciprocal %25 {approx = true} : vector<8x1xf32> -> vector<8x1xf32>
    %28 = vector.broadcast %27 : vector<8x1xf32> to vector<8x8xf32>
    %29 = arith.mulf %26, %28 : vector<8x8xf32>
    %30 = arith.truncf %29 : vector<8x8xf32> to vector<8x8xbf16>
    %c0_13 = arith.constant 0 : index
    %c0_14 = arith.constant 0 : index
    %31 = vector.load %arg9[%c0_13, %c0_14] : memref<8x32xbf16, #tpu.memory_space<vmem>>, vector<8x8xbf16>
    tpu.vector_store %arg9[%c0_13, %c0_14], %30 {strides = array<i32>} : memref<8x32xbf16, #tpu.memory_space<vmem>>, vector<8x8xbf16>,
    %32 = vector.extract_strided_slice %10 {offsets = [0, 8], sizes = [8, 8], strides = [1, 1]} : vector<8x32xbf16> to vector<8x8xbf16>
    %c1 = arith.constant 1 : index
    %c0_15 = arith.constant 0 : index
    %c0_16 = arith.constant 0 : index
    %33 = vector.load %arg8[%c1, %c0_15, %c0_16] : memref<8x8x8xbf16, #tpu.memory_space<vmem>>, vector<1x8x8xbf16>
    %34 = vector.shape_cast %33 : vector<1x8x8xbf16> to vector<8x8xbf16>
    %c5 = arith.constant 5 : index
    %c0_17 = arith.constant 0 : index
    %c0_18 = arith.constant 0 : index
    %35 = vector.load %arg8[%c5, %c0_17, %c0_18] : memref<8x8x8xbf16, #tpu.memory_space<vmem>>, vector<1x8x8xbf16>
    %36 = vector.shape_cast %35 : vector<1x8x8xbf16> to vector<8x8xbf16>
    %cst_19 = arith.constant dense<0.000000e+00> : vector<8x8xf32>
    %37 = tpu.matmul %32, %34, %cst_19 {dimension_numbers = #tpu.dot_dimension_numbers<[1], [1], [0], [0], [0, 0, 1, 0], [], []>} : vector<8x8xbf16>, vector<8x8xbf16>, vector<8x8xf32> -> vector<8x8xf32>
    %cst_20 = arith.constant dense<0xFF800000> : vector<8xf32>
    %38 = vector.multi_reduction <maximumf>, %37, %cst_20 [1] : vector<8x8xf32> to vector<8xf32>
    %39 = vector.shape_cast %38 : vector<8xf32> to vector<8x1xf32>
    %40 = vector.broadcast %39 : vector<8x1xf32> to vector<8x8xf32>
    %41 = arith.subf %37, %40 : vector<8x8xf32>
    %42 = arith.truncf %41 : vector<8x8xf32> to vector<8x8xbf16>
    %43 = math.exp %42 : vector<8x8xbf16>
    %44 = arith.extf %43 : vector<8x8xbf16> to vector<8x8xf32>
    %cst_21 = arith.constant dense<0.000000e+00> : vector<8xf32>
    %45 = vector.multi_reduction <add>, %44, %cst_21 [1] : vector<8x8xf32> to vector<8xf32>
    %46 = vector.shape_cast %45 : vector<8xf32> to vector<8x1xf32>
    %cst_22 = arith.constant dense<0.000000e+00> : vector<8x8xf32>
    %47 = tpu.matmul %43, %36, %cst_22 {dimension_numbers = #tpu.dot_dimension_numbers<[1], [0], [0], [1], [0, 0, 1, 1], [], []>} : vector<8x8xbf16>, vector<8x8xbf16>, vector<8x8xf32> -> vector<8x8xf32>
    %48 = tpu.reciprocal %46 {approx = true} : vector<8x1xf32> -> vector<8x1xf32>
    %49 = vector.broadcast %48 : vector<8x1xf32> to vector<8x8xf32>
    %50 = arith.mulf %47, %49 : vector<8x8xf32>
    %51 = arith.truncf %50 : vector<8x8xf32> to vector<8x8xbf16>
    %c0_23 = arith.constant 0 : index
    %c8 = arith.constant 8 : index
    %52 = vector.load %arg9[%c0_23, %c8] : memref<8x32xbf16, #tpu.memory_space<vmem>>, vector<8x8xbf16>
    tpu.vector_store %arg9[%c0_23, %c8], %51 {strides = array<i32>} : memref<8x32xbf16, #tpu.memory_space<vmem>>, vector<8x8xbf16>,
    %53 = vector.extract_strided_slice %10 {offsets = [0, 16], sizes = [8, 8], strides = [1, 1]} : vector<8x32xbf16> to vector<8x8xbf16>
    %c2 = arith.constant 2 : index
    %c0_24 = arith.constant 0 : index
    %c0_25 = arith.constant 0 : index
    %54 = vector.load %arg8[%c2, %c0_24, %c0_25] : memref<8x8x8xbf16, #tpu.memory_space<vmem>>, vector<1x8x8xbf16>
    %55 = vector.shape_cast %54 : vector<1x8x8xbf16> to vector<8x8xbf16>
    %c6 = arith.constant 6 : index
    %c0_26 = arith.constant 0 : index
    %c0_27 = arith.constant 0 : index
    %56 = vector.load %arg8[%c6, %c0_26, %c0_27] : memref<8x8x8xbf16, #tpu.memory_space<vmem>>, vector<1x8x8xbf16>
    %57 = vector.shape_cast %56 : vector<1x8x8xbf16> to vector<8x8xbf16>
    %cst_28 = arith.constant dense<0.000000e+00> : vector<8x8xf32>
    %58 = tpu.matmul %53, %55, %cst_28 {dimension_numbers = #tpu.dot_dimension_numbers<[1], [1], [0], [0], [0, 0, 1, 0], [], []>} : vector<8x8xbf16>, vector<8x8xbf16>, vector<8x8xf32> -> vector<8x8xf32>
    %cst_29 = arith.constant dense<0xFF800000> : vector<8xf32>
    %59 = vector.multi_reduction <maximumf>, %58, %cst_29 [1] : vector<8x8xf32> to vector<8xf32>
    %60 = vector.shape_cast %59 : vector<8xf32> to vector<8x1xf32>
    %61 = vector.broadcast %60 : vector<8x1xf32> to vector<8x8xf32>
    %62 = arith.subf %58, %61 : vector<8x8xf32>
    %63 = arith.truncf %62 : vector<8x8xf32> to vector<8x8xbf16>
    %64 = math.exp %63 : vector<8x8xbf16>
    %65 = arith.extf %64 : vector<8x8xbf16> to vector<8x8xf32>
    %cst_30 = arith.constant dense<0.000000e+00> : vector<8xf32>
    %66 = vector.multi_reduction <add>, %65, %cst_30 [1] : vector<8x8xf32> to vector<8xf32>
    %67 = vector.shape_cast %66 : vector<8xf32> to vector<8x1xf32>
    %cst_31 = arith.constant dense<0.000000e+00> : vector<8x8xf32>
    %68 = tpu.matmul %64, %57, %cst_31 {dimension_numbers = #tpu.dot_dimension_numbers<[1], [0], [0], [1], [0, 0, 1, 1], [], []>} : vector<8x8xbf16>, vector<8x8xbf16>, vector<8x8xf32> -> vector<8x8xf32>
    %69 = tpu.reciprocal %67 {approx = true} : vector<8x1xf32> -> vector<8x1xf32>
    %70 = vector.broadcast %69 : vector<8x1xf32> to vector<8x8xf32>
    %71 = arith.mulf %68, %70 : vector<8x8xf32>
    %72 = arith.truncf %71 : vector<8x8xf32> to vector<8x8xbf16>
    %c0_32 = arith.constant 0 : index
    %c16 = arith.constant 16 : index
    %73 = vector.load %arg9[%c0_32, %c16] : memref<8x32xbf16, #tpu.memory_space<vmem>>, vector<8x8xbf16>
    tpu.vector_store %arg9[%c0_32, %c16], %72 {strides = array<i32>} : memref<8x32xbf16, #tpu.memory_space<vmem>>, vector<8x8xbf16>,
    %74 = vector.extract_strided_slice %10 {offsets = [0, 24], sizes = [8, 8], strides = [1, 1]} : vector<8x32xbf16> to vector<8x8xbf16>
    %c3 = arith.constant 3 : index
    %c0_33 = arith.constant 0 : index
    %c0_34 = arith.constant 0 : index
    %75 = vector.load %arg8[%c3, %c0_33, %c0_34] : memref<8x8x8xbf16, #tpu.memory_space<vmem>>, vector<1x8x8xbf16>
    %76 = vector.shape_cast %75 : vector<1x8x8xbf16> to vector<8x8xbf16>
    %c7 = arith.constant 7 : index
    %c0_35 = arith.constant 0 : index
    %c0_36 = arith.constant 0 : index
    %77 = vector.load %arg8[%c7, %c0_35, %c0_36] : memref<8x8x8xbf16, #tpu.memory_space<vmem>>, vector<1x8x8xbf16>
    %78 = vector.shape_cast %77 : vector<1x8x8xbf16> to vector<8x8xbf16>
    %cst_37 = arith.constant dense<0.000000e+00> : vector<8x8xf32>
    %79 = tpu.matmul %74, %76, %cst_37 {dimension_numbers = #tpu.dot_dimension_numbers<[1], [1], [0], [0], [0, 0, 1, 0], [], []>} : vector<8x8xbf16>, vector<8x8xbf16>, vector<8x8xf32> -> vector<8x8xf32>
    %cst_38 = arith.constant dense<0xFF800000> : vector<8xf32>
    %80 = vector.multi_reduction <maximumf>, %79, %cst_38 [1] : vector<8x8xf32> to vector<8xf32>
    %81 = vector.shape_cast %80 : vector<8xf32> to vector<8x1xf32>
    %82 = vector.broadcast %81 : vector<8x1xf32> to vector<8x8xf32>
    %83 = arith.subf %79, %82 : vector<8x8xf32>
    %84 = arith.truncf %83 : vector<8x8xf32> to vector<8x8xbf16>
    %85 = math.exp %84 : vector<8x8xbf16>
    %86 = arith.extf %85 : vector<8x8xbf16> to vector<8x8xf32>
    %cst_39 = arith.constant dense<0.000000e+00> : vector<8xf32>
    %87 = vector.multi_reduction <add>, %86, %cst_39 [1] : vector<8x8xf32> to vector<8xf32>
    %88 = vector.shape_cast %87 : vector<8xf32> to vector<8x1xf32>
    %cst_40 = arith.constant dense<0.000000e+00> : vector<8x8xf32>
    %89 = tpu.matmul %85, %78, %cst_40 {dimension_numbers = #tpu.dot_dimension_numbers<[1], [0], [0], [1], [0, 0, 1, 1], [], []>} : vector<8x8xbf16>, vector<8x8xbf16>, vector<8x8xf32> -> vector<8x8xf32>
    %90 = tpu.reciprocal %88 {approx = true} : vector<8x1xf32> -> vector<8x1xf32>
    %91 = vector.broadcast %90 : vector<8x1xf32> to vector<8x8xf32>
    %92 = arith.mulf %89, %91 : vector<8x8xf32>
    %93 = arith.truncf %92 : vector<8x8xf32> to vector<8x8xbf16>
    %c0_41 = arith.constant 0 : index
    %c24 = arith.constant 24 : index
    %94 = vector.load %arg9[%c0_41, %c24] : memref<8x32xbf16, #tpu.memory_space<vmem>>, vector<8x8xbf16>
    tpu.vector_store %arg9[%c0_41, %c24], %93 {strides = array<i32>} : memref<8x32xbf16, #tpu.memory_space<vmem>>, vector<8x8xbf16>,
    %c0_42 = arith.constant 0 : index
    %c0_43 = arith.constant 0 : index
    %95 = vector.load %arg9[%c0_42, %c0_43] : memref<8x32xbf16, #tpu.memory_space<vmem>>, vector<8x32xbf16>
    %c0_44 = arith.constant 0 : index
    %c0_45 = arith.constant 0 : index
    %96 = vector.load %arg5[%c0_44, %c0_45] : memref<32x32xbf16, #tpu.memory_space<vmem>>, vector<32x32xbf16>
    %cst_46 = arith.constant dense<0.000000e+00> : vector<8x32xf32>
    %97 = tpu.matmul %95, %96, %cst_46 {dimension_numbers = #tpu.dot_dimension_numbers<[1], [0], [0], [1], [0, 0, 1, 1], [], []>} : vector<8x32xbf16>, vector<32x32xbf16>, vector<8x32xf32> -> vector<8x32xf32>
    %c0_47 = arith.constant 0 : index
    %c0_48 = arith.constant 0 : index
    %98 = vector.load %arg6[%c0_47, %c0_48] : memref<1x32xf32, #tpu.memory_space<vmem>>, vector<1x32xf32>
    %99 = vector.broadcast %98 : vector<1x32xf32> to vector<8x32xf32>
    %100 = arith.addf %97, %99 : vector<8x32xf32>
    %c0_49 = arith.constant 0 : index
    %c0_50 = arith.constant 0 : index
    %c0_51 = arith.constant 0 : index
    %101 = vector.load %arg7[%c0_49, %c0_50, %c0_51] : memref<1x8x32xf32, #tpu.memory_space<vmem>>, vector<1x8x32xf32>
    %102 = vector.shape_cast %101 : vector<1x8x32xf32> to vector<8x32xf32>
    %103 = vector.shape_cast %100 : vector<8x32xf32> to vector<1x8x32xf32>
    tpu.vector_store %arg7[%c0_49, %c0_50, %c0_51], %103 {strides = array<i32>} : memref<1x8x32xf32, #tpu.memory_space<vmem>>, vector<1x8x32xf32>,
    return
  }
  func.func @transform_0(%arg0: i32, %arg1: i32) -> (i32, i32, i32) {
    %c0_i32 = arith.constant 0 : i32
    %c0_i32_0 = arith.constant 0 : i32
    %c0_i32_1 = arith.constant 0 : i32
    return %arg0, %c0_i32, %c0_i32_0 : i32, i32, i32
  }
  func.func @transform_1(%arg0: i32, %arg1: i32) -> (i32, i32) {
    %c0_i32 = arith.constant 0 : i32
    %c0_i32_0 = arith.constant 0 : i32
    %c0_i32_1 = arith.constant 0 : i32
    return %c0_i32, %c0_i32_0 : i32, i32
  }
  func.func @transform_2(%arg0: i32, %arg1: i32) -> (i32, i32) {
    %c0_i32 = arith.constant 0 : i32
    %c0_i32_0 = arith.constant 0 : i32
    %c0_i32_1 = arith.constant 0 : i32
    return %c0_i32, %c0_i32_0 : i32, i32
  }
  func.func @transform_3(%arg0: i32, %arg1: i32) -> (i32, i32) {
    %c0_i32 = arith.constant 0 : i32
    %c0_i32_0 = arith.constant 0 : i32
    %c0_i32_1 = arith.constant 0 : i32
    return %c0_i32, %c0_i32_0 : i32, i32
  }
  func.func @transform_4(%arg0: i32, %arg1: i32) -> (i32, i32) {
    %c0_i32 = arith.constant 0 : i32
    %c0_i32_0 = arith.constant 0 : i32
    %c0_i32_1 = arith.constant 0 : i32
    return %c0_i32, %c0_i32_0 : i32, i32
  }
  func.func @transform_5(%arg0: i32, %arg1: i32) -> (i32, i32, i32) {
    %c0_i32 = arith.constant 0 : i32
    %c0_i32_0 = arith.constant 0 : i32
    return %arg0, %arg1, %c0_i32 : i32, i32, i32
  }
}

</mosaic_0001>

<bundles_post_ra>
// kernel: tpu_custom_call.1
= control target key start
LH: loop header
LB: loop body
LE: loop exit
PB: predicated region body
PF: predicated region fallthrough
CT: control target
= control target key end

     0   :  { %10 = vsyncpa [#allocation5], 0  ;;  %s1515_s0 = inlined_call_operand.hbm [shape: bf16[2,8,32], index: 0, kind: input, shape index: {}]   ;;  %s1516_s1 = inlined_call_operand.hbm [shape: bf16[32,32], index: 1, kind: input, shape index: {}]   ;;  %s1517_s2 = inlined_call_operand.hbm [shape: bf16[32,64], index: 2, kind: input, shape index: {}]   ;;  %s1518_s3 = inlined_call_operand.hbm [shape: bf16[32,32], index: 3, kind: input, shape index: {}]   ;;  %s1519_s4 = inlined_call_operand.vmem [shape: f32[1,32], index: 4, kind: input, shape index: {}]   ;;  %s1520_s5 = inlined_call_operand.hbm [shape: f32[2,8,32], index: 5, kind: output, shape index: {}]  }
   0x1   :  { %12 = vsyncpa [#allocation5 + $0x1], 0 }
   0x2   :  { %13 = vsyncpa [#allocation8], 0 }
   0x3   :  { %14 = vsyncpa [#allocation11], 0 }
   0x4   :  { %15 = vsyncpa [#allocation6], 0 }
   0x5   :  { %17 = vsyncpa [#allocation6 + $0x1], 0  ;;  %s1290_s18 = smov 0   ;;  %s1292_s19 = smov 0  }
   0x6   :  { %s1294_s20 = smov 0   ;;  %s1296_s21 = smov 0  }
   0x7   :  { %s1298_s22 = smov 0   ;;  %s1300_s23 = smov 0  }
   0x8 LB: > { %s851_s24 = sadd.s32 4294967295, %s1243_s23   ;;  %p853_p0 = scmp.ge.s32.totalorder %s1243_s23, 1  ;;  %s1243_s23 = sphi %s1300_s23, %s23_s23   ;;  %s1239_s22 = sphi %s1298_s22, %s1532_s22   ;;  %s1235_s21 = sphi %s1296_s21, %s1531_s21   ;;  %s1231_s20 = sphi %s1294_s20, %s1530_s20   ;;  %s1227_s19 = sphi %s1292_s19, %s1529_s19   ;;  %s1223_s18 = sphi %s1290_s18, %s1528_s18  }
   0x9   : > { %p1324_p1 = scmp.eq.s32.totalorder %s851_s24, 0  ;;  %p178_p2 = scmp.lt.s32.totalorder %s1243_s23, 3 }
   0xa   : > { %s189_s28 = sshll.u32 %s1516_s1, 4  ;;  %s1245_s30 = smov [#allocation7]   ;;  %s190_s28 = int_to_ptr.hbm [resolvable:$true] %s189_s28 }
   0xb   : > { %p1332_p3 = pnand %p853_p0, %p178_p2  ;;  %s191_s6 = sshll.u32 %s1245_s30, 4  ;;  %s192_s6 = int_to_ptr.vmem [resolvable:$true] %s191_s6 }
   0xc   : > { %p857_p6 = scmp.ge.s32.totalorder %s1243_s23, 2  ;;  %s203_s10 = sshll.u32 %s1517_s2, 4  ;;  %s204_s10 = int_to_ptr.hbm [resolvable:$true] %s203_s10 }
   0xd   : > { %p927_p4 = pneg %p1332_p3  ;;  %s1246_s11 = smov 64  }
   0xe   : > { %s1247_s12 = smov 4   ;;  %s1248_s13 = smov [#allocation9]  }
   0xf   : > { %p1340_p5 = pnand %p927_p4, %p1324_p1  ;;  %s205_s14 = sshll.u32 %s1248_s13, 4  ;;  %s206_s14 = int_to_ptr.vmem [resolvable:$true] %s205_s14 }
  0x10   : > { %s217_s17 = sshll.u32 %s1518_s3, 4  ;;  %s1249_s26 = smov [#allocation10]   ;;  %s218_s17 = int_to_ptr.hbm [resolvable:$true] %s217_s17 }
  0x11   : > { %930 = dma.hbm_to_vmem [thread:$0]  (!%p1340_p5), %s190_s28, 256, %s192_s6, [#allocation8], %s1246_s11, %s1246_s11, %s1247_s12  }
  0x12   : > { %933 = dma.hbm_to_vmem [thread:$0]  (!%p1340_p5), %s204_s10, 256, %s206_s14, [#allocation8], %s1246_s11, %s1246_s11, %s1247_s12  }
  0x13   : > { %s219_s27 = sshll.u32 %s1249_s26, 4  ;;  %s852_s28 = sadd.s32 4294967294, %s1243_s23   ;;  %s220_s27 = int_to_ptr.vmem [resolvable:$true] %s219_s27 }
  0x14   : > { %936 = dma.hbm_to_vmem [thread:$0]  (!%p1340_p5), %s218_s17, 256, %s220_s27, [#allocation11], %s1246_s11, %s1246_s11, %s1247_s12  }
  0x15   : > { %s35_s30 = sadd.s32 1, %s1239_s22  ;;  %s42_s6 = sadd.s32 1, %s1231_s20 }
  0x16   : > { %p37_p7 = scmp.ge.s32.totalorder %s35_s30, 2  ;;  %p49_p8 = scmp.ne.s32.totalorder %s1231_s20, %s1227_s19 }
  0x17   : > { %p50_p9 = scmp.eq.s32.totalorder %s1243_s23, 0  ;;  %p55_p10 = scmp.ne.s32.totalorder %s1227_s19, %s1223_s18 }
  0x18   : > { %s1534_s30 = smov (%p37_p7, %s35_s30), 0  ;;  %p165_p13 = scmp.eq.s32.totalorder %s851_s24, 1 }
  0x19   : > { %p1367_p11 = por %p50_p9, %p49_p8  ;;  %p1373_p12 = por %p1324_p1, %p55_p10 }
  0x1a   : > { %s39_s9 = ssub.s32 %s1239_s22, %s1534_s30  ;;  %p171_p2 = scmp.eq.s32.totalorder %s852_s28, 1 }
  0x1b   : > { %p40_p0 = scmp.eq.s32.totalorder %s39_s9, 0  ;;  %p1381_p4 = por %p165_p13, %p49_p8 }
  0x1c   : > { %p948_p5 = scmp.lt.s32.totalorder %s1243_s23, 2  ;;  %p1389_p7 = por %p171_p2, %p55_p10 }
  0x1d   : > { %s1387_s11 = scalar_select %p40_p0, %s1231_s20, %s42_s6  }
  0x1e   : > { %s236_s13 = sand.u32 1, %s1231_s20   ;;  %s859_s15 = sshll.u32 %s1239_s22, 2 }
  0x1f   : > { %s858_s14 = sshll.u32 %s236_s13, 2  ;;  %s244_s24 = scalar_lea.hbm %s1515_s0, %s859_s15 }
  0x20   : > { %s240_s26 = scalar_lea.vmem [#allocation4], %s858_s14  ;;  %s246_s28 = sshll.u32 %s244_s24, 4  ;;  %s247_s28 = int_to_ptr.hbm [resolvable:$true] %s246_s28 }
  0x21   : > { %s248_s27 = sshll.u32 %s240_s26, 4  ;;  %p938_p8 = pnand %p948_p5, %p1367_p11  ;;  %s249_s27 = int_to_ptr.vmem [resolvable:$true] %s248_s27 }
  0x22   : > { %s237_s6 = scalar_lea.sflag [#allocation5], %s236_s13  ;;  %257 = sbr.rel (%p1332_p3) target bundleno = 1164 (0x48c), region = 40 }
  0x23   : > { %940 = dma.hbm_to_vmem [thread:$0]  (!%p938_p8), %s247_s28, 64, %s249_s27, %s237_s6  }
  0x24   : > { %s1403_s9 = sand.u32 (!%p1332_p3), 1, %s1227_s19  }
  0x25   : > { %s861_s16 = sshll.u32 (!%p1332_p3), %s1403_s9, 2  ;;  %s260_s15 = scalar_lea.sflag (!%p1332_p3), [#allocation5], %s1403_s9 }
  0x26   : > { %s263_s14 = scalar_lea.vmem (!%p1332_p3), [#allocation4], %s861_s16 }
  0x27   : > { %1206 = dma.done.wait (%p1373_p12), %s260_s15, 64  }
  0x28   : > { %1208 = vsyncadd (%p1373_p12), %s260_s15, 4294967232 }
  0x29   : > { %1210 = dma.done.wait (%p1324_p1), [#allocation8], 512  }
  0x2a   : > { %1212 = vsyncadd (%p1324_p1), [#allocation8], 4294966784 }
  0x2b   : > { %1214 = dma.done.wait (%p1324_p1), [#allocation11], 256  }
  0x2c   : > { %1216 = vsyncadd (%p1324_p1), [#allocation11], 4294967040  ;;  %v906_v0 = vld [vmem:[#allocation9 + $0x8] sm:$0xff]  ;;  %v908_v1 = vld [vmem:[#allocation7 + $0x8] sm:$0xff]  ;;  %vm328_vm0 = vcmask 261120   ;;  %vm346_vm1 = vcmask 60416  }
  0x2d   : > { %338 = vmatpush.bf16.msra.mxu0 %v906_v0  ;;  %v905_v2 = vld [vmem:[#allocation9] sm:$0xff]  ;;  %416 = vmatpush.bf16.msra.mxu1 %v908_v1  ;;  %v907_v3 = vld [vmem:[#allocation7] sm:$0xff]  ;;  %v311_v4 = vld [vmem:[%s263_s14] sm:$0xf]  ;;  %s1250_s25 = smov 104   ;;  %s1251_s29 = smov 120  }
  0x2e   : > { %v389_v5 = vld [vmem:[%s263_s14] sm:$0xf]  ;;  %vm427_vm2 = vcmask 64512   ;;  %s1252_s8 = smov 112   ;;  %s1253_s7 = smov 88   ;;  %vm463_vm3 = vcmask 1043456  }
  0x2f   : > { %s1254_s13 = smov 80   ;;  %s1255_s17 = smov 96   ;;  %vm552_vm4 = vcmask 126016   ;;  %vm618_vm5 = vcmask 191616   ;;  %vm684_vm6 = vcmask 257216  }
  0x30   : > { %s1256_s24 = smov 72   ;;  %s1257_s26 = smov 8  }
  0x31   : > { %339 = vmatpush.bf16.msra.mxu0 %v905_v2  ;;  %417 = vmatpush.bf16.msra.mxu1 %v907_v3  ;;  %s1258_s27 = smov 16   ;;  %s1259_s28 = smov 24  }
  0x32   : > { %s902_s6 = sshll.u32 %s1235_s21, 3  ;;  %s865_s16 = sshll.u32 %s1403_s9, 3 }
  0x33   : > { %s725_s21 = scalar_lea.sflag [#allocation6], %s1403_s9 }
  0x34   : > { %874 = vmatmul.msk.bf16.vlgmr.msra.gmra.mxu0 %vm328_vm0, %v311_v4  ;;  %883 = vmatmul.msk.bf16.vlgmr.msra.gmra.mxu1 %vm328_vm0, %v389_v5 }
  0xb1   : > { %v341_v6 = vpop.f32.mrf.mxu0  ;;  %v419_v7 = vpop.f32.mrf.mxu1 }
  0xb2   : > { %v1421_v8 = vpack.c.bf16 %v341_v6, %v341_v6  ;;  %v423_v9 = vpack.c.bf16 %v419_v7, %v419_v7 }
  0xb4   : > { %347 = vst.msk [vmem:[#allocation2] sm:$0xf] %vm346_vm1, %v1421_v8  ;;  %374 = vrot.lane.b32.xlu2 %v1421_v8, %s1250_s25  ;;  %354 = vrot.lane.b32.xlu1 %v1421_v8, %s1251_s29  ;;  %v490_v10 = vunpack.c.l.b16 %v423_v9 }
  0xb6   : > { %v491_v11 = vpack.c.b16 %v490_v10, %v490_v10 }
  0xb9   : > { %v343_v12 = vpop.f32.mrf.mxu0  ;;  %v421_v13 = vpop.f32.mrf.mxu1 }
  0xbb   : > { %v424_v14 = vld [vmem:[#allocation2] sm:$0xf] }
  0xbc   : > { %492 = vrot.lane.b32.xlu2 %v491_v11, %s1251_s29  ;;  %364 = vrot.lane.b32.xlu1 %v1421_v8, %s1252_s8  ;;  %v432_v15 = vsel %vm427_vm2, %v424_v14, 0 }
  0xbd   : > { %441 = vmatpush.bf16.xpose.msra.mxu2 %v432_v15 }
  0xc4   : > { %624 = vrot.lane.b32.xlu2 %v491_v11, %s1250_s25  ;;  %884 = vmatmul.msk.bf16.vlgmr.msra.gmra.mxu2 %vm427_vm2, %v423_v9  ;;  %s736_s25 = scalar_lea.hbm %s1520_s5, %s902_s6  ;;  %s1173_s6 = scalar_lea.hbm %s1520_s5, 16 }
  0xc5   : > { %558 = vrot.lane.b32.xlu1 %v491_v11, %s1252_s8 }
  0xcc   : > { %359 = vrot.lane.b32.xlu2 %v1421_v8, %s1253_s7  ;;  %s305_s7 = scalar_lea.vmem [#allocation12], %s865_s16 }
  0xd4   : > { %369 = vrot.lane.b32.xlu2 %v1421_v8, %s1254_s13  ;;  %s738_s13 = sshll.u32 %s305_s7, 4  ;;  %s739_s13 = int_to_ptr.vmem [resolvable:$true] %s738_s13 }
 0x10e   : > { %v375_v16 = vpop.permute.xlu2 %374 }
 0x10f   : > { %378 = vst.msk [vmem:[#allocation2 + $0xc] sm:$0xf] %vm346_vm1, %v375_v16 }
 0x116   : > { %v493_v17 = vpop.permute.xlu2 %492  ;;  %v621_v47 = vld [vmem:[#allocation2 + $0xc] sm:$0xf] }
 0x117   : > { %v630_v49 = vsel %vm427_vm2, %v621_v47, 0 }
 0x11e   : > { %v625_v18 = vpop.permute.xlu2 %624 }
 0x126   : > { %v360_v19 = vpop.permute.xlu2 %359  ;;  %v355_v20 = vpop.permute.xlu1 %354 }
 0x127   : > { %363 = vst.msk [vmem:[#allocation2 + $0x14] sm:$0xf] %vm346_vm1, %v360_v19 }
 0x128   : > { %358 = vst.msk [vmem:[#allocation2 + $0x4] sm:$0xf] %vm346_vm1, %v355_v20 }
 0x12e   : > { %v370_v21 = vpop.permute.xlu2 %369  ;;  %v365_v22 = vpop.permute.xlu1 %364  ;;  %v488_v23 = vld [vmem:[#allocation2 + $0x14] sm:$0xf] }
 0x12f   : > { %373 = vst.msk [vmem:[#allocation2 + $0x18] sm:$0xf] %vm346_vm1, %v370_v21  ;;  %v530_v24 = vsel %vm463_vm3, %v488_v23, 0  ;;  %v486_v42 = vld [vmem:[#allocation2 + $0x4] sm:$0xf] }
 0x130   : > { %368 = vst.msk [vmem:[#allocation2 + $0x8] sm:$0xf] %vm346_vm1, %v365_v22  ;;  %539 = vmatpush.bf16.msrb.mxu0 %v530_v24  ;;  %v498_v46 = vsel %vm427_vm2, %v486_v42, 0 }
 0x136   : > { %v557_v25 = vld [vmem:[#allocation2 + $0x18] sm:$0xf] }
 0x137   : > { %v555_v26 = vld [vmem:[#allocation2 + $0x8] sm:$0xf]  ;;  %v596_v27 = vsel %vm463_vm3, %v557_v25, 0  ;;  %v559_v29 = vpop.permute.xlu1 %558 }
 0x138   : > { %v564_v28 = vsel %vm427_vm2, %v555_v26, 0  ;;  %605 = vmatpush.bf16.msrb.mxu2 %v596_v27 }
 0x139   : > { %573 = vmatpush.bf16.xpose.msrb.mxu1 %v564_v28 }
 0x140   : > { %888 = vmatmul.msk.bf16.vlgmr.msrb.gmra.mxu1 %vm427_vm2, %v559_v29 }
 0x147   : > { %v443_v30 = vpop.f32.mrf.mxu2 }
 0x148   : > { %v447_v31 = vsel %vm427_vm2, %v443_v30, -inf }
 0x149   : > { %448 = vmax.xlane.f32.xlu0 %v447_v31 }
 0x14f   : > { %v445_v32 = vpop.f32.mrf.mxu2 }
 0x15d   : > { %349 = vrot.lane.b32.xlu0 %v1421_v8, %s1255_s17  ;;  %s740_s17 = sshll.u32 %s736_s25, 4  ;;  %s741_s17 = int_to_ptr.hbm [resolvable:$true] %s740_s17 }
 0x1bc   : > { %v449_v34 = vpop.xlane.xlu0 %448 }
 0x1bd   : > { %v575_v33 = vpop.f32.mrf.mxu1  ;;  %v450_v36 = vsub.f32 %v443_v30, %v449_v34 }
 0x1be   : > { %v579_v35 = vsel %vm427_vm2, %v575_v33, -inf }
 0x1bf   : > { %580 = vmax.xlane.f32.xlu0 %v579_v35  ;;  %v451_v37 = vpack.c.bf16 %v450_v36, %v450_v36 }
 0x1c1   : > { %v452_v39 = vunpack.c.l.bf16 %v451_v37 }
 0x1c3   : > { %v453_v40 = vmul.f32 1.442695, %v452_v39 }
 0x1c5   : > { %v577_v38 = vpop.f32.mrf.mxu1  ;;  %1017 = vpow2.f32 %v453_v40 }
 0x1cb   : > { %v1018_v43 = vpop.eup %1017 }
 0x1cc   : > { %v1447_v48 = vpack.c.bf16 %v1018_v43, %v1018_v43 }
 0x1ce   : > { %v456_v24 = vunpack.c.l.bf16 %v1447_v48 }
 0x1cf   : > { %v350_v41 = vpop.permute.xlu0 %349 }
 0x1d0   : > { %353 = vst.msk [vmem:[#allocation2 + $0x10] sm:$0xf] %vm346_vm1, %v350_v41  ;;  %v457_v27 = vsel %vm427_vm2, %v456_v24, 0.0 }
 0x1d7   : > { %v426_v44 = vld [vmem:[#allocation2 + $0x10] sm:$0xf] }
 0x1d8   : > { %v465_v45 = vsel %vm463_vm3, %v426_v44, 0 }
 0x1d9   : > { %474 = vmatpush.bf16.msra.mxu3 %v465_v45 }
 0x1dc   : > { %885 = vmatmul.msk.bf16.vlgmr.msra.gmra.mxu3 %vm427_vm2, %v1447_v48 }
 0x1dd   : > { %507 = vmatpush.bf16.xpose.msrb.mxu3 %v498_v46 }
 0x1e5   : > { %639 = vmatpush.bf16.xpose.msra.mxu3 %v630_v49  ;;  %v910_v49 = vld [vmem:[#allocation10 + $0x8] sm:$0xff] }
 0x1e6   : > { %716 = vmatpush.bf16.msra.mxu1 %v910_v49 }
 0x1ec   : > { %886 = vmatmul.msk.bf16.vlgmr.msrb.gmra.mxu3 %vm427_vm2, %v493_v17 }
 0x1fc   : > { %890 = vmatmul.msk.bf16.vlgmr.msra.gmra.mxu3 %vm427_vm2, %v625_v18 }
 0x232   : > { %v581_v50 = vpop.xlane.xlu0 %580 }
 0x233   : > { %v582_v51 = vsub.f32 %v575_v33, %v581_v50  ;;  %v909_v50 = vld [vmem:[#allocation10] sm:$0xff] }
 0x234   : > { %717 = vmatpush.bf16.msra.mxu1 %v909_v50 }
 0x235   : > { %v583_v52 = vpack.c.bf16 %v582_v51, %v582_v51 }
 0x237   : > { %v584_v53 = vunpack.c.l.bf16 %v583_v52 }
 0x239   : > { %v585_v54 = vmul.f32 1.442695, %v584_v53 }
 0x23b   : > { %1019 = vpow2.f32 %v585_v54  ;;  %v1016_v54 = vld [vmem:[%s1519_s4] ss:$0 sm:$0xff] }
 0x241   : > { %v1020_v55 = vpop.eup %1019 }
 0x242   : > { %v587_v56 = vpack.c.bf16 %v1020_v55, %v1020_v55 }
 0x244   : > { %889 = vmatmul.msk.bf16.vlgmr.msrb.gmra.mxu2 %vm427_vm2, %v587_v56  ;;  %v588_v18 = vunpack.c.l.bf16 %v587_v56 }
 0x246   : > { %v589_v19 = vsel %vm427_vm2, %v588_v18, 0.0 }
 0x25f   : > { %v1455_v57 = vpop.f32.mrf.mxu3 }
 0x267   : > { %v478_v58 = vpop.f32.mrf.mxu3 }
 0x26f   : > { %v509_v59 = vpop.f32.mrf.mxu3 }
 0x270   : > { %v513_v60 = vsel %vm427_vm2, %v509_v59, -inf }
 0x271   : > { %514 = vmax.xlane.f32.xlu1 %v513_v60 }
 0x277   : > { %v511_v61 = vpop.f32.mrf.mxu3 }
 0x27f   : > { %v641_v62 = vpop.f32.mrf.mxu3 }
 0x280   : > { %v645_v63 = vsel %vm427_vm2, %v641_v62, -inf }
 0x281   : > { %646 = vmax.xlane.f32.xlu2 %v645_v63 }
 0x287   : > { %v643_v0 = vpop.f32.mrf.mxu3 }
 0x28a   : > { %379 = vrot.lane.b32.xlu1 %v1421_v8, %s1256_s24  ;;  %s1167_s24 = sshra.s32 %s741_s17, 4  ;;  %s1168_s24 = int_to_ptr.hbm [resolvable:$true] %s1167_s24 }
 0x28b   : > { %p1174_p10 = scmp.lt.s32.totalorder %s1168_s24, %s1520_s5 }
 0x2c7   : > { %v607_v1 = vpop.f32.mrf.mxu2 }
 0x2cf   : > { %v609_v2 = vpop.f32.mrf.mxu2 }
 0x2e4   : > { %v515_v3 = vpop.xlane.xlu1 %514 }
 0x2e5   : > { %v516_v4 = vsub.f32 %v509_v59, %v515_v3 }
 0x2e7   : > { %v517_v5 = vpack.c.bf16 %v516_v4, %v516_v4 }
 0x2e9   : > { %v518_v6 = vunpack.c.l.bf16 %v517_v5 }
 0x2eb   : > { %v519_v7 = vmul.f32 1.442695, %v518_v6 }
 0x2ed   : > { %1021 = vpow2.f32 %v519_v7 }
 0x2f3   : > { %v1022_v9 = vpop.eup %1021 }
 0x2f4   : > { %v521_v10 = vpack.c.bf16 %v1022_v9, %v1022_v9  ;;  %v647_v11 = vpop.xlane.xlu2 %646 }
 0x2f5   : > { %v648_v12 = vsub.f32 %v641_v62, %v647_v11 }
 0x2f6   : > { %887 = vmatmul.msk.bf16.vlgmr.msrb.gmra.mxu0 %vm427_vm2, %v521_v10  ;;  %v522_v13 = vunpack.c.l.bf16 %v521_v10 }
 0x2f7   : > { %v649_v14 = vpack.c.bf16 %v648_v12, %v648_v12 }
 0x2f8   : > { %v523_v15 = vsel %vm427_vm2, %v522_v13, 0.0 }
 0x2f9   : > { %v650_v16 = vunpack.c.l.bf16 %v649_v14  ;;  %524 = vadd.xlane.f32.xlu0 %v523_v15 }
 0x2fb   : > { %v651_v8 = vmul.f32 1.442695, %v650_v16 }
 0x2fc   : > { %v380_v17 = vpop.permute.xlu1 %379 }
 0x2fd   : > { %1023 = vpow2.f32 %v651_v8  ;;  %383 = vst.msk [vmem:[#allocation2 + $0x1c] sm:$0xf] %vm346_vm1, %v380_v17 }
 0x301   : > { %590 = vadd.xlane.f32.xlu0 %v589_v19 }
 0x303   : > { %v1024_v20 = vpop.eup %1023 }
 0x304   : > { %v653_v21 = vpack.c.bf16 %v1024_v20, %v1024_v20  ;;  %v623_v22 = vld [vmem:[#allocation2 + $0x1c] sm:$0xf] }
 0x305   : > { %v662_v23 = vsel %vm463_vm3, %v623_v22, 0 }
 0x306   : > { %671 = vmatpush.bf16.msra.mxu0 %v662_v23  ;;  %v654_v25 = vunpack.c.l.bf16 %v653_v21 }
 0x308   : > { %v655_v26 = vsel %vm427_vm2, %v654_v25, 0.0 }
 0x309   : > { %891 = vmatmul.msk.bf16.vlgmr.msra.gmra.mxu0 %vm427_vm2, %v653_v21  ;;  %656 = vadd.xlane.f32.xlu2 %v655_v26 }
 0x30a   : > { %458 = vadd.xlane.f32.xlu0 %v457_v27 }
 0x36c   : > { %v525_v28 = vpop.xlane.xlu0 %524 }
 0x36d   : > { %1025 = vrcp.f32 %v525_v28 }
 0x373   : > { %v1026_v29 = vpop.eup %1025  ;;  %v541_v30 = vpop.f32.mrf.mxu0 }
 0x374   : > { %v546_v31 = vmul.f32 %v1026_v29, %v541_v30  ;;  %v591_v32 = vpop.xlane.xlu0 %590 }
 0x375   : > { %1027 = vrcp.f32 %v591_v32 }
 0x376   : > { %v547_v33 = vpack.c.bf16 %v546_v31, %v546_v31 }
 0x378   : > { %549 = vrot.lane.b32.xlu2 %v547_v33, %s1257_s26  ;;  %s1169_s26 = scalar_lea.hbm %s1168_s24, 8 }
 0x379   : > { %p1170_p1 = scmp.ne.s32.totalorder %s1168_s24, %s1169_s26  ;;  %p1175_p11 = scmp.lt.s32.totalorder %s1173_s6, %s1169_s26 }
 0x37b   : > { %v1028_v34 = vpop.eup %1027  ;;  %v543_v35 = vpop.f32.mrf.mxu0  ;;  %p1171_p3 = pnand %p1170_p1, %p1381_p4  ;;  %p1176_p12 = por %p1175_p11, %p1174_p10 }
 0x37c   : > { %v612_v36 = vmul.f32 %v1028_v34, %v607_v1  ;;  %v657_v37 = vpop.xlane.xlu2 %656 }
 0x37d   : > { %v459_v38 = vpop.xlane.xlu0 %458  ;;  %p1172_p9 = pneg %p1171_p3 }
 0x37e   : > { %1029 = vrcp.f32 %v459_v38  ;;  %v613_v39 = vpack.c.bf16 %v612_v36, %v612_v36 }
 0x37f   : > { %1031 = vrcp.f32 %v657_v37  ;;  %p1177_p13 = pnand %p1176_p12, %p1172_p9 }
 0x380   : > { %615 = vrot.lane.b32.xlu1 %v613_v39, %s1258_s27 }
 0x384   : > { %v1030_v40 = vpop.eup %1029 }
 0x385   : > { %v481_v41 = vmul.f32 %v1030_v40, %v1455_v57  ;;  %v1032_v42 = vpop.eup %1031 }
 0x386   : > { %v673_v43 = vpop.f32.mrf.mxu0 }
 0x387   : > { %v482_v44 = vpack.c.bf16 %v481_v41, %v481_v41  ;;  %v678_v45 = vmul.f32 %v1032_v42, %v673_v43 }
 0x389   : > { %484 = vst.msk [vmem:[#allocation3] sm:$0xf] %vm346_vm1, %v482_v44  ;;  %v679_v46 = vpack.c.bf16 %v678_v45, %v678_v45 }
 0x38b   : > { %681 = vrot.lane.b32.xlu0 %v679_v46, %s1259_s28 }
 0x38e   : > { %v675_v47 = vpop.f32.mrf.mxu0 }
 0x3d2   : > { %v550_v48 = vpop.permute.xlu2 %549 }
 0x3d3   : > { %553 = vst.msk [vmem:[#allocation3] sm:$0xf] %vm552_vm4, %v550_v48 }
 0x3f2   : > { %v616_v51 = vpop.permute.xlu1 %615 }
 0x3f3   : > { %619 = vst.msk [vmem:[#allocation3] sm:$0xf] %vm618_vm5, %v616_v51 }
 0x3fd   : > { %v682_v52 = vpop.permute.xlu0 %681 }
 0x3fe   : > { %685 = vst.msk [vmem:[#allocation3] sm:$0xf] %vm684_vm6, %v682_v52 }
 0x405   : > { %v686_v53 = vld [vmem:[#allocation3] sm:$0xf] }
 0x406   : > { %900 = vmatmul.msk.bf16.vlgmr.msra.gmra.mxu1 %vm328_vm0, %v686_v53 }
 0x483   : > { %v719_v55 = vpop.f32.mrf.mxu1 }
 0x484   : > { %v720_v56 = vadd.f32 %v1016_v54, %v719_v55 }
 0x486   : > { %723 = vst.msk [vmem:[%s305_s7] sm:$0xff] %vm328_vm0, %v720_v56 }
 0x487   : > { %1180 = shalt.err (!%p1177_p13)
}
 0x488   : > { %925 = dma.vmem_to_hbm [thread:$0]  (%p1381_p4), %s739_s13, 128, %s741_s17, %s725_s21  }
 0x48b   : > { %v721_v57 = vpop.f32.mrf.mxu1 }
 0x48c PF: > { %s752_s9 = sand.u32 1, %s1223_s18   ;;  %p942_p0 = pnand %p857_p6, %p1389_p7 }
 0x48d   : > { %s753_s14 = scalar_lea.sflag [#allocation6], %s752_s9 }
 0x48e   : > { %p943_p2 = pneg %p942_p0 }
 0x490   : > { %1218 = dma.done.wait (%p943_p2), %s753_s14, 128  }
 0x491   : > { %1220 = vsyncadd (%p943_p2), %s753_s14, 4294967168  ;;  %s23_s23 = sadd.s32 1, %s1243_s23   ;;  %s1528_s18 = smov %s1227_s19 }
 0x492   : > { %p20_p5 = scmp.ge.s32.totalorder %s23_s23, 4   ;;  %s1529_s19 = smov %s1231_s20 }
 0x493   : > { %s1530_s20 = smov %s1387_s11  ;;  %s1531_s21 = smov %s1239_s22 }
 0x494   : > { %s1532_s22 = smov %s1534_s30  ;;  %22 = sbr.rel (!%p20_p5) target bundleno = 8 (0x8), region = 116 }
 0x499   :  { %759 = vsyncpa [#allocation5], 1 }
 0x49a   :  { %761 = vsyncpa [#allocation5 + $0x1], 1 }
 0x49b   :  { %762 = vsyncpa [#allocation8], 1 }
 0x49c   :  { %763 = vsyncpa [#allocation11], 1 }
 0x49d   :  { %764 = vsyncpa [#allocation6], 1 }
 0x49e   :  { %766 = vsyncpa [#allocation6 + $0x1], 1 }

</bundles_post_ra>
